<compile_context>
chip_gen: v6e
topology: v6e:2x2x1
jax: 0.10.0
libtpu: 0.0.40
codegen_flags: <defaults>
</compile_context>

<pallas_src>
import numpy as np
import jax
import jax.numpy as jnp
from jax.experimental import pallas as pl
from jax.experimental.pallas import tpu as pltpu

LANE = 128  # TPU vreg lane width


def laplacian_matrix(N, alpha=0.0008):
    """Same as the PyTorch `Linear(N)` helper: periodic 1-D Laplacian."""
    dx2 = np.zeros((N, N), dtype=np.float64)
    for i in range(N):
        dx2[i, i] = -2.0
        dx2[i, (i - 1) % N] = 1.0
        dx2[i, (i + 1) % N] = 1.0
    dx = 1.0 / N
    return (alpha * (1.0 / dx ** 2) * dx2).astype(np.float32)


# ---------------------------------------------------------------------------
# Kernels
# ---------------------------------------------------------------------------
def odefunc_kernel(y_ref, w0_ref, bh_ref, w2_ref, w3_ref, w4_ref, w5_ref,
                   b5_ref, o_ref, lin_sc):
    """One f-eval on a (TB, N) row tile. Weights are lane-padded / pre-fused."""
    NP = b5_ref.shape[1]          # padded output width (multiple of 128)
    N = o_ref.shape[1]            # true output width

    y = y_ref[...]                # (TB, N)

    # Fused [lin | layer-1] matmul: one K=N MXU pass produces both lin(y)
    # (first NP lanes) and the layer-1 pre-activation (remaining HP lanes).
    z = jnp.dot(y, w0_ref[...], preferred_element_type=jnp.float32)   # (TB, NP+HP)
    # Stage lin(y) in VMEM so it is not held in vregs across the whole MLP.
    lin_sc[...] = z[:, :NP]
    h = jnp.maximum(z[:, NP:] + bh_ref[0:1, :], 0.0)                  # (TB, HP)

    h = jnp.maximum(
        jnp.dot(h, w2_ref[...], preferred_element_type=jnp.float32) + bh_ref[1:2, :], 0.0)
    h = jnp.maximum(
        jnp.dot(h, w3_ref[...], preferred_element_type=jnp.float32) + bh_ref[2:3, :], 0.0)
    h = jnp.maximum(
        jnp.dot(h, w4_ref[...], preferred_element_type=jnp.float32) + bh_ref[3:4, :], 0.0)
    net = jnp.dot(h, w5_ref[...], preferred_element_type=jnp.float32) + b5_ref[...]

    # Static offset-0 lane truncation -> direct (TB, N) store; no post-kernel slice.
    o_ref[...] = (lin_sc[...] + net)[:, :N]


def make_euler_kernel(dt):
    """Fused explicit-Euler integrator: grid=(num_steps,), weights VMEM-resident,
    state y carried in the resident output block across grid steps."""
    dt = float(dt)

    def kernel(y0_ref, w0_ref, bh_ref, w2_ref, w3_ref, w4_ref, w5_ref,
               b5_ref, o_ref):
        step = pl.program_id(0)
        NP = b5_ref.shape[1]
        N = o_ref.shape[1]

        @pl.when(step == 0)
        def _():
            o_ref[...] = y0_ref[...]          # load initial state into resident block

        y = o_ref[...]                        # (B, N) current state
        z = jnp.dot(y, w0_ref[...], preferred_element_type=jnp.float32)
        lin = z[:, :NP]
        h = jnp.maximum(z[:, NP:] + bh_ref[0:1, :], 0.0)
        h = jnp.maximum(
            jnp.dot(h, w2_ref[...], preferred_element_type=jnp.float32) + bh_ref[1:2, :], 0.0)
        h = jnp.maximum(
            jnp.dot(h, w3_ref[...], preferred_element_type=jnp.float32) + bh_ref[2:3, :], 0.0)
        h = jnp.maximum(
            jnp.dot(h, w4_ref[...], preferred_element_type=jnp.float32) + bh_ref[3:4, :], 0.0)
        net = jnp.dot(h, w5_ref[...], preferred_element_type=jnp.float32) + b5_ref[...]
        f = (lin + net)[:, :N]
        o_ref[...] = y + dt * f               # y_{k+1}; written back to HBM once at grid end

    return kernel


# ---------------------------------------------------------------------------
# One-time parameter prep (hoisted out of the hot path)
# ---------------------------------------------------------------------------
def _pad2d(x, rows, cols):
    r, c = x.shape
    return jnp.pad(x, ((0, rows - r), (0, cols - c)))


def _pad1d(b, cols):
    return jnp.pad(b, (0, cols - b.shape[0]))


def prepare_params(params):
    """Pre-transpose, zero-pad to 128 lanes, fuse [A.T | W1.T], pack hidden biases."""
    (A, (w1, b1), (w2, b2), (w3, b3), (w4, b4), (w5, b5)) = params
    N = A.shape[0]
    H = w1.shape[0]
    NP = max(LANE, -(-N // LANE) * LANE)
    HP = max(LANE, -(-H // LANE) * LANE)

    a_t = _pad2d(jnp.asarray(A).T, N, NP)          # (N, NP)
    w1t = _pad2d(w1.T, N, HP)                      # (N, HP)
    w0 = jnp.concatenate([a_t, w1t], axis=1)       # (N, NP + HP) fused lin + layer-1

    w2t = _pad2d(w2.T, HP, HP)
    w3t = _pad2d(w3.T, HP, HP)
    w4t = _pad2d(w4.T, HP, HP)
    w5t = _pad2d(w5.T, HP, NP)

    bh = jnp.stack([_pad1d(b1, HP), _pad1d(b2, HP),
                    _pad1d(b3, HP), _pad1d(b4, HP)], axis=0)   # (4, HP) packed
    b5r = _pad1d(b5, NP).reshape(1, NP)

    return (w0, bh, w2t, w3t, w4t, w5t, b5r)


def _cost(prepped, B, N, n_steps=1):
    (w0, bh, w2t, w3t, w4t, w5t, b5r) = prepped
    NP = b5r.shape[1]
    HP = bh.shape[1]
    flops = 2 * B * (N * (NP + HP) + 3 * HP * HP + HP * NP) * n_steps
    weight_bytes = 4 * int(sum(int(a.size) for a in (w0, bh, w2t, w3t, w4t, w5t, b5r)))
    bytes_accessed = weight_bytes + 4 * (2 * B * N)
    return pl.CostEstimate(flops=int(flops), transcendentals=0,
                           bytes_accessed=int(bytes_accessed))


# ---------------------------------------------------------------------------
# Hot-path wrappers
# ---------------------------------------------------------------------------
def odefunc_forward(t, y, prepped, *, block_b=None):
    """Single f-eval: dy/dt = lin(y) + net(y). `t` unused (signature parity)."""
    del t
    (w0, bh, w2t, w3t, w4t, w5t, b5r) = prepped
    B, N = y.shape
    NP = b5r.shape[1]

    if block_b is None:
        block_b = min(B, 128)
    assert B % block_b == 0, "batch must be divisible by block_b"
    grid = (B // block_b,)

    const2 = lambda i: (0, 0)   # weights: same block every step -> single DMA, VMEM-resident
    in_specs = [
        pl.BlockSpec((block_b, N), lambda i: (i, 0)),   # y tiled on rows
        pl.BlockSpec(w0.shape, const2),
        pl.BlockSpec(bh.shape, const2),
        pl.BlockSpec(w2t.shape, const2),
        pl.BlockSpec(w3t.shape, const2),
        pl.BlockSpec(w4t.shape, const2),
        pl.BlockSpec(w5t.shape, const2),
        pl.BlockSpec(b5r.shape, const2),
    ]
    out_spec = pl.BlockSpec((block_b, N), lambda i: (i, 0))

    return pl.pallas_call(
        odefunc_kernel,
        out_shape=jax.ShapeDtypeStruct((B, N), jnp.float32),
        grid_spec=pltpu.PrefetchScalarGridSpec(
            num_scalar_prefetch=0,
            grid=grid,
            in_specs=in_specs,
            out_specs=out_spec,
            scratch_shapes=[pltpu.VMEM((block_b, NP), jnp.float32)],
        ),
        compiler_params=pltpu.CompilerParams(
            dimension_semantics=("parallel",),      # v7x: batch tiles across both TCs
            vmem_limit_bytes=32 * 1024 * 1024,
        ),
        cost_estimate=_cost(prepped, B, N, 1),
    )(y, w0, bh, w2t, w3t, w4t, w5t, b5r)


def odefunc_integrate(y0, prepped, *, dt, num_steps):
    """Fused explicit-Euler integration of dy/dt = lin(y)+net(y): one pallas_call,
    weights DMA'd once and reused for every step (amortizes dispatch + weight DMA)."""
    (w0, bh, w2t, w3t, w4t, w5t, b5r) = prepped
    B, N = y0.shape

    const2 = lambda s: (0, 0)
    in_specs = [
        pl.BlockSpec((B, N), const2),
        pl.BlockSpec(w0.shape, const2),
        pl.BlockSpec(bh.shape, const2),
        pl.BlockSpec(w2t.shape, const2),
        pl.BlockSpec(w3t.shape, const2),
        pl.BlockSpec(w4t.shape, const2),
        pl.BlockSpec(w5t.shape, const2),
        pl.BlockSpec(b5r.shape, const2),
    ]
    out_spec = pl.BlockSpec((B, N), const2)

    return pl.pallas_call(
        make_euler_kernel(dt),
        out_shape=jax.ShapeDtypeStruct((B, N), jnp.float32),
        grid_spec=pltpu.PrefetchScalarGridSpec(
            num_scalar_prefetch=0,
            grid=(num_steps,),
            in_specs=in_specs,
            out_specs=out_spec,
        ),
        compiler_params=pltpu.CompilerParams(
            dimension_semantics=("arbitrary",),     # sequential time dependence
            vmem_limit_bytes=32 * 1024 * 1024,
        ),
        cost_estimate=_cost(prepped, B, N, num_steps),
    )(y0, w0, bh, w2t, w3t, w4t, w5t, b5r)


# ---------------------------------------------------------------------------
# Init + pure-JAX reference
# ---------------------------------------------------------------------------
def init_params(key, N):
    """Deterministic synthetic init matching the PyTorch __init__ shapes."""
    H = N * 9 // 8
    A = jnp.asarray(laplacian_matrix(N))   # lin weight, frozen
    ks = jax.random.split(key, 5)
    std = 0.1
    w1 = std * jax.random.normal(ks[0], (H, N), dtype=jnp.float32)
    w2 = std * jax.random.normal(ks[1], (H, H), dtype=jnp.float32)
    w3 = std * jax.random.normal(ks[2], (H, H), dtype=jnp.float32)
    w4 = std * jax.random.normal(ks[3], (H, H), dtype=jnp.float32)
    w5 = std * jax.random.normal(ks[4], (N, H), dtype=jnp.float32)
    zeros = lambda n: jnp.zeros((n,), jnp.float32)
    return (A, (w1, zeros(H)), (w2, zeros(H)), (w3, zeros(H)),
            (w4, zeros(H)), (w5, zeros(N)))


def odefunc_reference(y, params):
    """Pure-JAX reference of the PyTorch forward (high-precision matmuls)."""
    (A, (w1, b1), (w2, b2), (w3, b3), (w4, b4), (w5, b5)) = params
    hi = jax.lax.Precision.HIGHEST
    lin = jnp.dot(y, A.T, precision=hi)
    h = jnp.maximum(jnp.dot(y, w1.T, precision=hi) + b1, 0.0)
    h = jnp.maximum(jnp.dot(h, w2.T, precision=hi) + b2, 0.0)
    h = jnp.maximum(jnp.dot(h, w3.T, precision=hi) + b3, 0.0)
    h = jnp.maximum(jnp.dot(h, w4.T, precision=hi) + b4, 0.0)
    net = jnp.dot(h, w5.T, precision=hi) + b5
    return lin + net
# TODO(synk): the PyTorch nfe counter is host-side mutable state; track it in the caller.


if __name__ == "__main__":
    N = 64          # spatial resolution (features); hidden = N * 9 // 8 = 72
    B = 16          # batch of states y
    key = jax.random.PRNGKey(0)
    kp, ky = jax.random.split(key)

    params = init_params(kp, N)
    prepped = prepare_params(params)          # one-time layout prep (not in hot path)
    y = jax.random.normal(ky, (B, N), dtype=jnp.float32)
    t = jnp.float32(0.0)                      # unused, kept for signature parity

    # 1) module forward (single f-eval), batch grid of two (8, N) tiles
    fwd = jax.jit(lambda t_, y_: odefunc_forward(t_, y_, prepped, block_b=8))
    out = jax.block_until_ready(fwd(t, y))
    ref = odefunc_reference(y, params)
    np.testing.assert_allclose(np.asarray(out), np.asarray(ref), rtol=2e-3, atol=2e-3)

    # 2) fused time loop: weights stay VMEM-resident across all f-evals
    dt, num_steps = 0.002, 16
    integ = jax.jit(lambda y0: odefunc_integrate(y0, prepped, dt=dt, num_steps=num_steps))
    y_T = jax.block_until_ready(integ(y))
    y_ref = y
    for _ in range(num_steps):
        y_ref = y_ref + dt * odefunc_reference(y_ref, params)
    np.testing.assert_allclose(np.asarray(y_T), np.asarray(y_ref), rtol=5e-3, atol=5e-3)

    print("KERNEL_OK")
</pallas_src>

<mosaic_0001>
module attributes {stable_mosaic.version = 11 : i64} {
  func.func @odefunc_kernel(%arg0: i32, %arg1: memref<8x64xf32, #tpu.memory_space<vmem>>, %arg2: memref<64x256xf32, #tpu.memory_space<vmem>>, %arg3: memref<4x128xf32, #tpu.memory_space<vmem>>, %arg4: memref<128x128xf32, #tpu.memory_space<vmem>>, %arg5: memref<128x128xf32, #tpu.memory_space<vmem>>, %arg6: memref<128x128xf32, #tpu.memory_space<vmem>>, %arg7: memref<128x128xf32, #tpu.memory_space<vmem>>, %arg8: memref<1x128xf32, #tpu.memory_space<vmem>>, %arg9: memref<8x64xf32, #tpu.memory_space<vmem>>, %arg10: memref<8x128xf32, #tpu.memory_space<vmem>>) attributes {dimension_semantics = [#tpu.dimension_semantics<parallel>], iteration_bounds = array<i64: 2>, scalar_prefetch = 0 : i64, scratch_operands = 1 : i64, tpu.core_type = #tpu.core_type<tc>, window_params = [{transform_indices = @transform_0, window_bounds = array<i64: 8, 64>}, {pipeline_mode = #tpu.pipeline_mode<synchronous>, transform_indices = @transform_1, window_bounds = array<i64: 64, 256>}, {pipeline_mode = #tpu.pipeline_mode<synchronous>, transform_indices = @transform_2, window_bounds = array<i64: 4, 128>}, {pipeline_mode = #tpu.pipeline_mode<synchronous>, transform_indices = @transform_3, window_bounds = array<i64: 128, 128>}, {pipeline_mode = #tpu.pipeline_mode<synchronous>, transform_indices = @transform_4, window_bounds = array<i64: 128, 128>}, {pipeline_mode = #tpu.pipeline_mode<synchronous>, transform_indices = @transform_5, window_bounds = array<i64: 128, 128>}, {pipeline_mode = #tpu.pipeline_mode<synchronous>, transform_indices = @transform_6, window_bounds = array<i64: 128, 128>}, {pipeline_mode = #tpu.pipeline_mode<synchronous>, transform_indices = @transform_7, window_bounds = array<i64: 1, 128>}, {transform_indices = @transform_8, window_bounds = array<i64: 8, 64>}]} {
    %c0 = arith.constant 0 : index
    %c0_0 = arith.constant 0 : index
    %0 = vector.load %arg1[%c0, %c0_0] : memref<8x64xf32, #tpu.memory_space<vmem>>, vector<8x64xf32>
    %c0_1 = arith.constant 0 : index
    %c0_2 = arith.constant 0 : index
    %1 = vector.load %arg2[%c0_1, %c0_2] : memref<64x256xf32, #tpu.memory_space<vmem>>, vector<64x256xf32>
    %cst = arith.constant dense<0.000000e+00> : vector<8x256xf32>
    %2 = tpu.matmul %0, %1, %cst {dimension_numbers = #tpu.dot_dimension_numbers<[1], [0], [0], [1], [0, 0, 1, 1], [], []>} : vector<8x64xf32>, vector<64x256xf32>, vector<8x256xf32> -> vector<8x256xf32>
    %3 = vector.extract_strided_slice %2 {offsets = [0, 0], sizes = [8, 128], strides = [1, 1]} : vector<8x256xf32> to vector<8x128xf32>
    %c0_3 = arith.constant 0 : index
    %c0_4 = arith.constant 0 : index
    %4 = vector.load %arg10[%c0_3, %c0_4] : memref<8x128xf32, #tpu.memory_space<vmem>>, vector<8x128xf32>
    tpu.vector_store %arg10[%c0_3, %c0_4], %3 {strides = array<i32>} : memref<8x128xf32, #tpu.memory_space<vmem>>, vector<8x128xf32>,
    %5 = vector.extract_strided_slice %2 {offsets = [0, 128], sizes = [8, 128], strides = [1, 1]} : vector<8x256xf32> to vector<8x128xf32>
    %c0_5 = arith.constant 0 : index
    %c0_6 = arith.constant 0 : index
    %6 = vector.load %arg3[%c0_5, %c0_6] : memref<4x128xf32, #tpu.memory_space<vmem>>, vector<1x128xf32>
    %7 = vector.broadcast %6 : vector<1x128xf32> to vector<8x128xf32>
    %8 = arith.addf %5, %7 : vector<8x128xf32>
    %cst_7 = arith.constant 0.000000e+00 : f32
    %9 = vector.broadcast %cst_7 : f32 to vector<8x128xf32>
    %10 = arith.maximumf %8, %9 : vector<8x128xf32>
    %c0_8 = arith.constant 0 : index
    %c0_9 = arith.constant 0 : index
    %11 = vector.load %arg4[%c0_8, %c0_9] : memref<128x128xf32, #tpu.memory_space<vmem>>, vector<128x128xf32>
    %cst_10 = arith.constant dense<0.000000e+00> : vector<8x128xf32>
    %12 = tpu.matmul %10, %11, %cst_10 {dimension_numbers = #tpu.dot_dimension_numbers<[1], [0], [0], [1], [0, 0, 1, 1], [], []>} : vector<8x128xf32>, vector<128x128xf32>, vector<8x128xf32> -> vector<8x128xf32>
    %c1 = arith.constant 1 : index
    %c0_11 = arith.constant 0 : index
    %13 = vector.load %arg3[%c1, %c0_11] : memref<4x128xf32, #tpu.memory_space<vmem>>, vector<1x128xf32>
    %14 = vector.broadcast %13 : vector<1x128xf32> to vector<8x128xf32>
    %15 = arith.addf %12, %14 : vector<8x128xf32>
    %cst_12 = arith.constant 0.000000e+00 : f32
    %16 = vector.broadcast %cst_12 : f32 to vector<8x128xf32>
    %17 = arith.maximumf %15, %16 : vector<8x128xf32>
    %c0_13 = arith.constant 0 : index
    %c0_14 = arith.constant 0 : index
    %18 = vector.load %arg5[%c0_13, %c0_14] : memref<128x128xf32, #tpu.memory_space<vmem>>, vector<128x128xf32>
    %cst_15 = arith.constant dense<0.000000e+00> : vector<8x128xf32>
    %19 = tpu.matmul %17, %18, %cst_15 {dimension_numbers = #tpu.dot_dimension_numbers<[1], [0], [0], [1], [0, 0, 1, 1], [], []>} : vector<8x128xf32>, vector<128x128xf32>, vector<8x128xf32> -> vector<8x128xf32>
    %c2 = arith.constant 2 : index
    %c0_16 = arith.constant 0 : index
    %20 = vector.load %arg3[%c2, %c0_16] : memref<4x128xf32, #tpu.memory_space<vmem>>, vector<1x128xf32>
    %21 = vector.broadcast %20 : vector<1x128xf32> to vector<8x128xf32>
    %22 = arith.addf %19, %21 : vector<8x128xf32>
    %cst_17 = arith.constant 0.000000e+00 : f32
    %23 = vector.broadcast %cst_17 : f32 to vector<8x128xf32>
    %24 = arith.maximumf %22, %23 : vector<8x128xf32>
    %c0_18 = arith.constant 0 : index
    %c0_19 = arith.constant 0 : index
    %25 = vector.load %arg6[%c0_18, %c0_19] : memref<128x128xf32, #tpu.memory_space<vmem>>, vector<128x128xf32>
    %cst_20 = arith.constant dense<0.000000e+00> : vector<8x128xf32>
    %26 = tpu.matmul %24, %25, %cst_20 {dimension_numbers = #tpu.dot_dimension_numbers<[1], [0], [0], [1], [0, 0, 1, 1], [], []>} : vector<8x128xf32>, vector<128x128xf32>, vector<8x128xf32> -> vector<8x128xf32>
    %c3 = arith.constant 3 : index
    %c0_21 = arith.constant 0 : index
    %27 = vector.load %arg3[%c3, %c0_21] : memref<4x128xf32, #tpu.memory_space<vmem>>, vector<1x128xf32>
    %28 = vector.broadcast %27 : vector<1x128xf32> to vector<8x128xf32>
    %29 = arith.addf %26, %28 : vector<8x128xf32>
    %cst_22 = arith.constant 0.000000e+00 : f32
    %30 = vector.broadcast %cst_22 : f32 to vector<8x128xf32>
    %31 = arith.maximumf %29, %30 : vector<8x128xf32>
    %c0_23 = arith.constant 0 : index
    %c0_24 = arith.constant 0 : index
    %32 = vector.load %arg7[%c0_23, %c0_24] : memref<128x128xf32, #tpu.memory_space<vmem>>, vector<128x128xf32>
    %cst_25 = arith.constant dense<0.000000e+00> : vector<8x128xf32>
    %33 = tpu.matmul %31, %32, %cst_25 {dimension_numbers = #tpu.dot_dimension_numbers<[1], [0], [0], [1], [0, 0, 1, 1], [], []>} : vector<8x128xf32>, vector<128x128xf32>, vector<8x128xf32> -> vector<8x128xf32>
    %c0_26 = arith.constant 0 : index
    %c0_27 = arith.constant 0 : index
    %34 = vector.load %arg8[%c0_26, %c0_27] : memref<1x128xf32, #tpu.memory_space<vmem>>, vector<1x128xf32>
    %35 = vector.broadcast %34 : vector<1x128xf32> to vector<8x128xf32>
    %36 = arith.addf %33, %35 : vector<8x128xf32>
    %c0_28 = arith.constant 0 : index
    %c0_29 = arith.constant 0 : index
    %37 = vector.load %arg10[%c0_28, %c0_29] : memref<8x128xf32, #tpu.memory_space<vmem>>, vector<8x128xf32>
    %38 = arith.addf %37, %36 : vector<8x128xf32>
    %39 = vector.extract_strided_slice %38 {offsets = [0, 0], sizes = [8, 64], strides = [1, 1]} : vector<8x128xf32> to vector<8x64xf32>
    %c0_30 = arith.constant 0 : index
    %c0_31 = arith.constant 0 : index
    %40 = vector.load %arg9[%c0_30, %c0_31] : memref<8x64xf32, #tpu.memory_space<vmem>>, vector<8x64xf32>
    tpu.vector_store %arg9[%c0_30, %c0_31], %39 {strides = array<i32>} : memref<8x64xf32, #tpu.memory_space<vmem>>, vector<8x64xf32>,
    return
  }
  func.func @transform_0(%arg0: i32) -> (i32, i32) {
    %c0_i32 = arith.constant 0 : i32
    %c0_i32_0 = arith.constant 0 : i32
    return %arg0, %c0_i32 : i32, i32
  }
  func.func @transform_1(%arg0: i32) -> (i32, i32) {
    %c0_i32 = arith.constant 0 : i32
    %c0_i32_0 = arith.constant 0 : i32
    %c0_i32_1 = arith.constant 0 : i32
    return %c0_i32, %c0_i32_0 : i32, i32
  }
  func.func @transform_2(%arg0: i32) -> (i32, i32) {
    %c0_i32 = arith.constant 0 : i32
    %c0_i32_0 = arith.constant 0 : i32
    %c0_i32_1 = arith.constant 0 : i32
    return %c0_i32, %c0_i32_0 : i32, i32
  }
  func.func @transform_3(%arg0: i32) -> (i32, i32) {
    %c0_i32 = arith.constant 0 : i32
    %c0_i32_0 = arith.constant 0 : i32
    %c0_i32_1 = arith.constant 0 : i32
    return %c0_i32, %c0_i32_0 : i32, i32
  }
  func.func @transform_4(%arg0: i32) -> (i32, i32) {
    %c0_i32 = arith.constant 0 : i32
    %c0_i32_0 = arith.constant 0 : i32
    %c0_i32_1 = arith.constant 0 : i32
    return %c0_i32, %c0_i32_0 : i32, i32
  }
  func.func @transform_5(%arg0: i32) -> (i32, i32) {
    %c0_i32 = arith.constant 0 : i32
    %c0_i32_0 = arith.constant 0 : i32
    %c0_i32_1 = arith.constant 0 : i32
    return %c0_i32, %c0_i32_0 : i32, i32
  }
  func.func @transform_6(%arg0: i32) -> (i32, i32) {
    %c0_i32 = arith.constant 0 : i32
    %c0_i32_0 = arith.constant 0 : i32
    %c0_i32_1 = arith.constant 0 : i32
    return %c0_i32, %c0_i32_0 : i32, i32
  }
  func.func @transform_7(%arg0: i32) -> (i32, i32) {
    %c0_i32 = arith.constant 0 : i32
    %c0_i32_0 = arith.constant 0 : i32
    %c0_i32_1 = arith.constant 0 : i32
    return %c0_i32, %c0_i32_0 : i32, i32
  }
  func.func @transform_8(%arg0: i32) -> (i32, i32) {
    %c0_i32 = arith.constant 0 : i32
    %c0_i32_0 = arith.constant 0 : i32
    return %arg0, %c0_i32 : i32, i32
  }
}

</mosaic_0001>

<bundles_post_ra>
// kernel: _lambda_.1
= control target key start
LH: loop header
LB: loop body
LE: loop exit
PB: predicated region body
PF: predicated region fallthrough
CT: control target
= control target key end

     0   :  { %s1947_s0 = inlined_call_operand.hbm [shape: f32[16,64], index: 0, kind: input, shape index: {}]   ;;  %s1948_s1 = inlined_call_operand.hbm [shape: f32[64,256], index: 1, kind: input, shape index: {}]   ;;  %s1949_s2 = inlined_call_operand.vmem [shape: f32[4,128], index: 2, kind: input, shape index: {}]   ;;  %s1950_s3 = inlined_call_operand.hbm [shape: f32[128,128], index: 3, kind: input, shape index: {}]   ;;  %s1951_s4 = inlined_call_operand.hbm [shape: f32[128,128], index: 4, kind: input, shape index: {}]   ;;  %s1952_s5 = inlined_call_operand.hbm [shape: f32[128,128], index: 5, kind: input, shape index: {}]   ;;  %s1953_s6 = inlined_call_operand.hbm [shape: f32[128,128], index: 6, kind: input, shape index: {}]   ;;  %s1954_s7 = inlined_call_operand.vmem [shape: f32[1,128], index: 7, kind: input, shape index: {}]   ;;  %s1955_s8 = inlined_call_operand.hbm [shape: f32[16,64], index: 8, kind: output, shape index: {}]  }
   0x1   :  { %1960 = sst [smem:[#allocation20_spill]] %s1948_s1 }
   0x2   :  { %1961 = sst [smem:[#allocation21_spill]] %s1950_s3 }
   0x3   :  { %1962 = sst [smem:[#allocation22_spill]] %s1951_s4 }
   0x4   :  { %13 = vsyncpa [#allocation4], 0 }
   0x5   :  { %15 = vsyncpa [#allocation4 + $0x1], 0 }
   0x6   :  { %16 = vsyncpa [#allocation7], 0 }
   0x7   :  { %17 = vsyncpa [#allocation10], 0 }
   0x8   :  { %18 = vsyncpa [#allocation13], 0 }
   0x9   :  { %19 = vsyncpa [#allocation5], 0 }
   0xa   :  { %21 = vsyncpa [#allocation5 + $0x1], 0  ;;  %s1631_s27 = smov 0   ;;  %s1633_s28 = smov 0  }
   0xb   :  { %s1635_s29 = smov 0   ;;  %s1637_s30 = smov 0  }
   0xc LB: > { %s1573_s9 = smov [#allocation6]   ;;  %s1652_s11 = sadd.s32 4294967295, %s1571_s30   ;;  %s1571_s30 = sphi %s1637_s30, %s1987_s30   ;;  %s1567_s29 = sphi %s1635_s29, %s1986_s29   ;;  %s1563_s28 = sphi %s1633_s28, %s1985_s28   ;;  %s1559_s27 = sphi %s1631_s27, %s1984_s27  }
   0xd   : > { %s243_s10 = sshll.u32 %s1573_s9, 4  ;;  %p999_p0 = scmp.ge.s32.totalorder %s1571_s30, 1  ;;  %s244_s10 = int_to_ptr.vmem [resolvable:$true] %s243_s10 }
   0xe   : > { %p1956_p1 = scmp.eq.s32.totalorder %s1652_s11, 0  ;;  %p231_p2 = scmp.lt.s32.totalorder %s1571_s30, 3 }
   0xf   : > { %s1574_s14 = smov [#allocation9]   ;;  %s1575_s16 = smov [#allocation8]  }
  0x10   : > { %p1657_p3 = pnand %p999_p0, %p231_p2  ;;  %s272_s15 = sshll.u32 %s1574_s14, 4  ;;  %s1670_s15 = int_to_ptr.vmem [resolvable:$true] %s272_s15 }
  0x11   : > { %s1672_s17 = sshll.u32 %s1575_s16, 4  ;;  %s1348_s19 = scalar_lea.vmem %s244_s10, 2048  ;;  %s260_s17 = int_to_ptr.vmem [resolvable:$true] %s1672_s17 }
  0x12   : > { %s1963_s12 = scalar_select %p1657_p3, 1, 0 }
  0x13   : > { %p1258_p5 = pneg %p1657_p3  ;;  %p1349_p8 = scmp.ne.s32.totalorder %s244_s10, %s1348_s19 }
  0x14   : > { %p1356_p11 = scmp.lt.s32.totalorder %s244_s10, %s244_s10  ;;  %p1357_p12 = scmp.lt.s32.totalorder %s1348_s19, %s1348_s19 }
  0x15   : > { %p1666_p6 = pnand %p1258_p5, %p1956_p1 }
  0x16   : > { %p1358_p13 = por %p1357_p12, %p1356_p11 }
  0x17   : > { %p1676_p7 = pneg %p1666_p6 }
  0x19   : > { %p1351_p9 = pnand %p1349_p8, %p1676_p7 }
  0x1b   : > { %p1352_p10 = pneg %p1351_p9 }
  0x1d   : > { %p1359_p0 = pnand %p1358_p13, %p1352_p10 }
  0x1f   : > { %1362 = shalt.err (!%p1359_p0)
}
  0x20   : > { %s1576_s20 = smov 256   ;;  %s1577_s21 = smov 16  }
  0x21   : > { %s1966_s1 = sld [smem:[#allocation20_spill]]  ;;  %s1374_s24 = scalar_lea.vmem %s1670_s15, 2048 }
  0x22   : > { %p1375_p2 = scmp.ne.s32.totalorder %s1670_s15, %s1374_s24  ;;  %p1382_p9 = scmp.lt.s32.totalorder %s1670_s15, %s1670_s15 }
  0x23   : > { %p1383_p10 = scmp.lt.s32.totalorder %s1374_s24, %s1374_s24 }
  0x24   : > { %p1377_p5 = pnand %p1375_p2, %p1676_p7 }
  0x25   : > { %p1384_p11 = por %p1383_p10, %p1382_p9 }
  0x26   : > { %p1378_p8 = pneg %p1377_p5 }
  0x27   : > { %1261 = dma.hbm_to_vmem [thread:$0]  (!%p1666_p6), %s1966_s1, 2048, %s244_s10, [#allocation7], %s1576_s20, %s1576_s20, %s1577_s21  }
  0x28   : > { %p1385_p12 = pnand %p1384_p11, %p1378_p8 }
  0x2a   : > { %1388 = shalt.err (!%p1385_p12)
}
  0x2b   : > { %s1578_s25 = smov 128   ;;  %s1579_s26 = smov 8  }
  0x2c   : > { %s1967_s4 = sld [smem:[#allocation22_spill]]  ;;  %s1400_s14 = scalar_lea.vmem %s260_s17, 2048 }
  0x2d   : > { %p1401_p13 = scmp.ne.s32.totalorder %s260_s17, %s1400_s14  ;;  %p1408_p5 = scmp.lt.s32.totalorder %s260_s17, %s260_s17 }
  0x2e   : > { %p1409_p8 = scmp.lt.s32.totalorder %s1400_s14, %s1400_s14 }
  0x2f   : > { %p1403_p0 = pnand %p1401_p13, %p1676_p7 }
  0x30   : > { %p1410_p9 = por %p1409_p8, %p1408_p5 }
  0x31   : > { %p1404_p2 = pneg %p1403_p0 }
  0x32   : > { %1267 = dma.hbm_to_vmem [thread:$0]  (!%p1666_p6), %s1967_s4, 2048, %s1670_s15, [#allocation10], %s1578_s25, %s1578_s25, %s1579_s26  }
  0x33   : > { %p1411_p10 = pnand %p1410_p9, %p1404_p2 }
  0x35   : > { %1414 = shalt.err (!%p1411_p10)
}
  0x36   : > { %s1968_s3 = sld [smem:[#allocation21_spill]]  ;;  %s1580_s15 = smov [#allocation11]  }
  0x37   : > { %s285_s20 = sshll.u32 %s1580_s15, 4  ;;  %s1581_s21 = smov [#allocation12]   ;;  %s286_s20 = int_to_ptr.vmem [resolvable:$true] %s285_s20 }
  0x38   : > { %s298_s22 = sshll.u32 %s1581_s21, 4  ;;  %s1426_s23 = scalar_lea.vmem %s286_s20, 2048  ;;  %s299_s22 = int_to_ptr.vmem [resolvable:$true] %s298_s22 }
  0x39   : > { %p1427_p11 = scmp.ne.s32.totalorder %s286_s20, %s1426_s23  ;;  %p1434_p0 = scmp.lt.s32.totalorder %s286_s20, %s286_s20 }
  0x3a   : > { %p1435_p2 = scmp.lt.s32.totalorder %s1426_s23, %s1426_s23 }
  0x3b   : > { %p1429_p12 = pnand %p1427_p11, %p1676_p7 }
  0x3c   : > { %1264 = dma.hbm_to_vmem [thread:$0]  (!%p1666_p6), %s1968_s3, 2048, %s260_s17, [#allocation7], %s1578_s25, %s1578_s25, %s1579_s26  }
  0x3d   : > { %p1430_p13 = pneg %p1429_p12  ;;  %p1436_p5 = por %p1435_p2, %p1434_p0 }
  0x3f   : > { %p1437_p8 = pnand %p1436_p5, %p1430_p13 }
  0x41   : > { %1440 = shalt.err (!%p1437_p8)
}
  0x42   : > { %1270 = dma.hbm_to_vmem [thread:$0]  (!%p1666_p6), %s1952_s5, 2048, %s286_s20, [#allocation10], %s1578_s25, %s1578_s25, %s1579_s26  }
  0x43   : > { %s1452_s9 = scalar_lea.vmem %s299_s22, 2048  ;;  %p1460_p12 = scmp.lt.s32.totalorder %s299_s22, %s299_s22 }
  0x44   : > { %p1453_p9 = scmp.ne.s32.totalorder %s299_s22, %s1452_s9  ;;  %p1461_p0 = scmp.lt.s32.totalorder %s1452_s9, %s1452_s9 }
  0x46   : > { %p1455_p10 = pnand %p1453_p9, %p1676_p7  ;;  %p1462_p13 = por %p1461_p0, %p1460_p12 }
  0x48   : > { %p1456_p11 = pneg %p1455_p10 }
  0x4a   : > { %p1463_p2 = pnand %p1462_p13, %p1456_p11 }
  0x4c   : > { %1466 = shalt.err (!%p1463_p2)
}
  0x4d   : > { %1273 = dma.hbm_to_vmem [thread:$0]  (!%p1666_p6), %s1953_s6, 2048, %s299_s22, [#allocation13], %s1578_s25, %s1578_s25, %s1579_s26  }
  0x4e   : > { %s998_s13 = sadd.s32 4294967294, %s1571_s30   ;;  %s1735_s18 = sadd.s32 1, %s1571_s30  }
  0x4f   : > { %s34_s16 = sadd.s32 1, %s1567_s29  ;;  %s31_s19 = ssub.s32 %s1571_s30, %s1735_s18 }
  0x50   : > { %p41_p7 = scmp.ne.s32.totalorder %s1567_s29, %s1563_s28  ;;  %p32_p5 = scmp.eq.s32.totalorder %s31_s19, 0 }
  0x51   : > { %p42_p8 = scmp.eq.s32.totalorder %s1571_s30, 0  ;;  %p47_p9 = scmp.ne.s32.totalorder %s1563_s28, %s1559_s27 }
  0x52   : > { %p218_p10 = scmp.eq.s32.totalorder %s1652_s11, 1  ;;  %p224_p0 = scmp.eq.s32.totalorder %s998_s13, 1 }
  0x53   : > { %s1747_s15 = scalar_select %p32_p5, %s1567_s29, %s34_s16  }
  0x54   : > { %p43_p11 = por %p42_p8, %p41_p7  ;;  %p1751_p12 = por %p1956_p1, %p47_p9 }
  0x55   : > { %p1755_p6 = por %p218_p10, %p41_p7  ;;  %p1287_p13 = scmp.lt.s32.totalorder %s1571_s30, 2 }
  0x56   : > { %s1969_s20 = scalar_select %p1751_p12, 1, 0 }
  0x57   : > { %s1970_s25 = scalar_select %p1755_p6, 1, 0 }
  0x58   : > { %s315_s26 = sand.u32 1, %s1567_s29   ;;  %p1761_p2 = por %p224_p0, %p47_p9 }
  0x59   : > { %s1006_s22 = sshll.u32 %s315_s26, 3  ;;  %s1007_s23 = sshll.u32 %s1571_s30, 7 }
  0x5a   : > { %s1971_s21 = scalar_select %p1761_p2, 1, 0 }
  0x5b   : > { %s1769_s9 = scalar_lea.hbm %s1947_s0, %s1007_s23  ;;  %s319_s10 = scalar_lea.vmem [#allocation3], %s1006_s22 }
  0x5c   : > { %s326_s14 = sshll.u32 %s319_s10, 4  ;;  %p1771_p7 = pnand %p1287_p13, %p43_p11  ;;  %s327_s14 = int_to_ptr.vmem [resolvable:$true] %s326_s14 }
  0x5d   : > { %s316_s16 = scalar_lea.sflag [#allocation4], %s315_s26  ;;  %s1467_s19 = scalar_lea.hbm %s1769_s9, 128 }
  0x5e   : > { %p1468_p5 = scmp.ne.s32.totalorder %s1769_s9, %s1467_s19  ;;  %p1469_p8 = pneg %p1771_p7 }
  0x5f   : > { %s1472_s24 = scalar_lea.hbm %s1947_s0, 256  ;;  %p1473_p11 = scmp.lt.s32.totalorder %s1769_s9, %s1947_s0 }
  0x60   : > { %p1470_p9 = pnand %p1469_p8, %p1468_p5  ;;  %p1474_p0 = scmp.lt.s32.totalorder %s1472_s24, %s1467_s19 }
  0x62   : > { %p1471_p10 = pneg %p1470_p9  ;;  %p1475_p13 = por %p1474_p0, %p1473_p11 }
  0x64   : > { %p1476_p4 = pnand %p1475_p13, %p1471_p10 }
  0x66   : > { %1479 = shalt.err (!%p1476_p4)
}
  0x67   : > { %s1480_s10 = scalar_lea.vmem %s327_s14, 128  ;;  %s1582_s26 = smov [#allocation3]  }
  0x68   : > { %p1481_p1 = scmp.ne.s32.totalorder %s327_s14, %s1480_s10  ;;  %s1485_s3 = sshll.u32 %s1582_s26, 4  ;;  %s1486_s3 = int_to_ptr.vmem [resolvable:$false] %s1485_s3 }
  0x69   : > { %s1487_s4 = scalar_lea.vmem %s1486_s3, 256  ;;  %p1488_p5 = scmp.lt.s32.totalorder %s327_s14, %s1486_s3 }
  0x6a   : > { %p1483_p2 = pnand %p1481_p1, %p1469_p8  ;;  %p1489_p9 = scmp.lt.s32.totalorder %s1487_s4, %s1480_s10 }
  0x6c   : > { %p1484_p6 = pneg %p1483_p2  ;;  %p1490_p12 = por %p1489_p9, %p1488_p5 }
  0x6e   : > { %p1491_p3 = pnand %p1490_p12, %p1484_p6 }
  0x70   : > { %1494 = shalt.err (!%p1491_p3)
}
  0x71   : > { %1277 = dma.hbm_to_vmem [thread:$0]  (!%p1771_p7), %s1769_s9, 128, %s327_s14, %s316_s16  }
  0x72   : > { %p1973_p10 = scmp.ne.s32.totalorder %s1963_s12, 0 }
  0x73   : > { %s1792_s1 = sand.u32 (!%p1973_p10), 1, %s1563_s28   ;;  %p1974_p1 = scmp.ne.s32.totalorder (!%p1973_p10), %s1969_s20, 0 }
  0x74   : > { %335 = sbr.rel (%p1973_p10) target bundleno = 1149 (0x47d), region = 52  ;;  %s1009_s19 = sshll.u32 (!%p1973_p10), %s1792_s1, 3 }
  0x75   : > { %s338_s3 = scalar_lea.sflag (!%p1973_p10), [#allocation4], %s1792_s1  ;;  %s1798_s4 = scalar_lea.vmem (!%p1973_p10), [#allocation3], %s1009_s19 }
  0x79   : > { %1538 = dma.done.wait (%p1974_p1), %s338_s3, 128  }
  0x7a   : > { %1540 = vsyncadd (%p1974_p1), %s338_s3, 4294967168  ;;  %p1975_p3 = scmp.eq.s32.totalorder %s1652_s11, 0 }
  0x7c   : > { %1542 = dma.done.wait (%p1975_p3), [#allocation7], 4096   ;;  %p1976_p4 = pmov %p1975_p3 }
  0x7d   : > { %p1977_p12 = pmov %p1975_p3 }
  0x7e   : > { %1544 = vsyncadd (%p1976_p4), [#allocation7], 4294963200 }
  0x7f   : > { %1546 = dma.done.wait (%p1977_p12), [#allocation10], 4096   ;;  %p1978_p6 = pmov %p1975_p3 }
  0x80   : > { %p1979_p2 = pmov %p1975_p3 }
  0x81   : > { %1548 = vsyncadd (%p1978_p6), [#allocation10], 4294963200 }
  0x82   : > { %1550 = dma.done.wait (%p1979_p2), [#allocation13], 2048   ;;  %p1980_p7 = pmov %p1979_p2 }
  0x83   : > { %v1583_v0 = vmov 0.0   ;;  %v410_v1 = vld [vmem:[#allocation6 + $0x78] sm:$0xff]  ;;  %v409_v2 = vld [vmem:[#allocation6 + $0x70] sm:$0xff]  ;;  %v408_v3 = vld [vmem:[#allocation6 + $0x68] sm:$0xff]  ;;  %vm411_vm0 = vcmask 523264   ;;  %vm1584_vm1 = vmmov 0  }
  0x84   : > { %1552 = vsyncadd (%p1980_p7), [#allocation13], 4294965248  ;;  %479 = vmatprep.mubr.f32.mxu0 %v1583_v0  ;;  %1094 = vmatprep.subr.mxu1 %v1583_v0  ;;  %v407_v4 = vld [vmem:[#allocation6 + $0x60] sm:$0xff]  ;;  %v406_v5 = vld [vmem:[#allocation6 + $0x58] sm:$0xff]  ;;  %s1023_s10 = sshll.u32 %s1652_s11, 7  ;;  %s393_s26 = scalar_lea.vmem [#allocation14], %s1009_s19 }
  0x85   : > { %431 = vmatprep.subr.mxu0 %v410_v1  ;;  %v405_v6 = vld [vmem:[#allocation6 + $0x50] sm:$0xff]  ;;  %v404_v7 = vld [vmem:[#allocation6 + $0x48] sm:$0xff]  ;;  %v403_v8 = vld [vmem:[#allocation6 + $0x40] sm:$0xff]  ;;  %1126 = vmatprep.mubr.msk.f32.mxu1 %vm1584_vm1, %v1583_v0  ;;  %s880_s3 = sshll.u32 %s393_s26, 4  ;;  %s878_s20 = scalar_lea.hbm %s1955_s8, %s1023_s10  ;;  %s881_s3 = int_to_ptr.vmem [resolvable:$true] %s880_s3 }
  0x86   : > { %432 = vmatpush1.msra.mxu0 %v409_v2  ;;  %v509_v9 = vld [vmem:[#allocation8 + $0x78] sm:$0xff]  ;;  %v508_v11 = vld [vmem:[#allocation8 + $0x70] sm:$0xff]  ;;  %v507_v13 = vld [vmem:[#allocation8 + $0x68] sm:$0xff]  ;;  %s867_s9 = scalar_lea.sflag [#allocation5], %s1792_s1  ;;  %s1495_s14 = scalar_lea.vmem %s881_s3, 128 }
  0x87   : > { %433 = vmatprep.subr.mxu0 %v408_v3  ;;  %v402_v10 = vld [vmem:[#allocation6 + $0x38] sm:$0xff]  ;;  %1095 = vmatpush3.msra.mxu1 %v509_v9  ;;  %v401_v12 = vld [vmem:[#allocation6 + $0x30] sm:$0xff]  ;;  %v400_v14 = vld [vmem:[#allocation6 + $0x28] sm:$0xff]  ;;  %p1496_p8 = scmp.ne.s32.totalorder %s881_s3, %s1495_s14  ;;  %p1981_p11 = scmp.ne.s32.totalorder %s1970_s25, 0 }
  0x88   : > { %434 = vmatpush1.msra.mxu0 %v407_v4  ;;  %1096 = vmatprep.subr.mxu1 %v1583_v0  ;;  %v399_v15 = vld [vmem:[#allocation6 + $0x20] sm:$0xff]  ;;  %v398_v17 = vld [vmem:[#allocation6 + $0x18] sm:$0xff]  ;;  %v397_v18 = vld [vmem:[#allocation6 + $0x10] sm:$0xff]  ;;  %s1585_s11 = smov [#allocation14]  }
  0x89   : > { %435 = vmatprep.subr.mxu0 %v406_v5  ;;  %1097 = vmatpush3.msra.mxu1 %v508_v11  ;;  %v506_v16 = vld [vmem:[#allocation8 + $0x60] sm:$0xff]  ;;  %v505_v19 = vld [vmem:[#allocation8 + $0x58] sm:$0xff]  ;;  %v396_v20 = vld [vmem:[#allocation6 + $0x8] sm:$0xff]  ;;  %p1497_p0 = pnand %p1496_p8, %p1981_p11  ;;  %s1499_s19 = sshll.u32 %s1585_s11, 4  ;;  %s1500_s19 = int_to_ptr.vmem [resolvable:$false] %s1499_s19 }
  0x8a   : > { %436 = vmatpush1.msra.mxu0 %v405_v6  ;;  %1098 = vmatprep.subr.mxu1 %v1583_v0  ;;  %v395_v21 = vld [vmem:[#allocation6] sm:$0xff]  ;;  %v504_v22 = vld [vmem:[#allocation8 + $0x50] sm:$0xff]  ;;  %v503_v24 = vld [vmem:[#allocation8 + $0x48] sm:$0xff]  ;;  %s1501_s13 = scalar_lea.vmem %s1500_s19, 256  ;;  %p1502_p5 = scmp.lt.s32.totalorder %s881_s3, %s1500_s19 }
  0x8b   : > { %437 = vmatprep.subr.mxu0 %v404_v7  ;;  %1099 = vmatpush3.msra.mxu1 %v507_v13  ;;  %v394_v23 = vld [vmem:[%s1798_s4] sm:$0xff]  ;;  %v502_v25 = vld [vmem:[#allocation8 + $0x40] sm:$0xff]  ;;  %v499_v28 = vld [vmem:[#allocation8 + $0x28] sm:$0xff]  ;;  %p1498_p13 = pneg %p1497_p0  ;;  %p1503_p9 = scmp.lt.s32.totalorder %s1501_s13, %s1495_s14 }
  0x8c   : > { %438 = vmatpush1.msra.mxu0 %v403_v8  ;;  %1100 = vmatprep.subr.mxu1 %v1583_v0  ;;  %v501_v26 = vld [vmem:[#allocation8 + $0x38] sm:$0xff]  ;;  %v500_v27 = vld [vmem:[#allocation8 + $0x30] sm:$0xff]  ;;  %v498_v29 = vld [vmem:[#allocation8 + $0x20] sm:$0xff] }
  0x8d   : > { %439 = vmatprep.subr.mxu0 %v402_v10  ;;  %1101 = vmatpush3.msra.mxu1 %v506_v16  ;;  %v497_v30 = vld [vmem:[#allocation8 + $0x18] sm:$0xff]  ;;  %v496_v31 = vld [vmem:[#allocation8 + $0x10] sm:$0xff]  ;;  %v495_v32 = vld [vmem:[#allocation8 + $0x8] sm:$0xff]  ;;  %p1504_p10 = por %p1503_p9, %p1502_p5 }
  0x8e   : > { %440 = vmatpush1.msra.mxu0 %v401_v12  ;;  %1102 = vmatprep.subr.mxu1 %v1583_v0  ;;  %v494_v33 = vld [vmem:[#allocation8] sm:$0xff]  ;;  %v601_v34 = vld [vmem:[#allocation9 + $0x78] sm:$0xff]  ;;  %v600_v35 = vld [vmem:[#allocation9 + $0x70] sm:$0xff] }
  0x8f   : > { %441 = vmatprep.subr.mxu0 %v400_v14  ;;  %1103 = vmatpush3.msra.mxu1 %v505_v19  ;;  %v599_v36 = vld [vmem:[#allocation9 + $0x68] sm:$0xff]  ;;  %v598_v37 = vld [vmem:[#allocation9 + $0x60] sm:$0xff]  ;;  %v597_v38 = vld [vmem:[#allocation9 + $0x58] sm:$0xff]  ;;  %p1505_p1 = pnand %p1504_p10, %p1498_p13 }
  0x90   : > { %442 = vmatpush1.msra.mxu0 %v399_v15  ;;  %1104 = vmatprep.subr.mxu1 %v1583_v0  ;;  %v596_v39 = vld [vmem:[#allocation9 + $0x50] sm:$0xff]  ;;  %v595_v40 = vld [vmem:[#allocation9 + $0x48] sm:$0xff]  ;;  %v594_v41 = vld [vmem:[#allocation9 + $0x40] sm:$0xff] }
  0x91   : > { %443 = vmatprep.subr.mxu0 %v398_v17  ;;  %1105 = vmatpush3.msra.mxu1 %v504_v22  ;;  %v593_v42 = vld [vmem:[#allocation9 + $0x38] sm:$0xff]  ;;  %v592_v43 = vld [vmem:[#allocation9 + $0x30] sm:$0xff]  ;;  %v591_v44 = vld [vmem:[#allocation9 + $0x28] sm:$0xff] }
  0x92   : > { %444 = vmatpush1.msra.mxu0 %v397_v18  ;;  %1106 = vmatprep.subr.mxu1 %v1583_v0  ;;  %v590_v45 = vld [vmem:[#allocation9 + $0x20] sm:$0xff]  ;;  %v589_v46 = vld [vmem:[#allocation9 + $0x18] sm:$0xff]  ;;  %v1017_v48 = vld [vmem:[%s1949_s2] ss:$0 sm:$0xff] }
  0x93   : > { %445 = vmatprep.subr.mxu0 %v396_v20  ;;  %1107 = vmatpush3.msra.mxu1 %v503_v24  ;;  %v588_v52 = vld [vmem:[#allocation9 + $0x10] sm:$0xff]  ;;  %v587_v53 = vld [vmem:[#allocation9 + $0x8] sm:$0xff]  ;;  %v586_v54 = vld [vmem:[#allocation9] sm:$0xff] }
  0x94   : > { %446 = vmatpush1.msra.mxu0 %v395_v21  ;;  %1108 = vmatprep.subr.mxu1 %v1583_v0  ;;  %v693_v55 = vld [vmem:[#allocation11 + $0x78] sm:$0xff]  ;;  %v692_v56 = vld [vmem:[#allocation11 + $0x70] sm:$0xff]  ;;  %v691_v57 = vld [vmem:[#allocation11 + $0x68] sm:$0xff] }
  0x95   : > { %1016 = vmatmul.mubr.msk.f32.vlgmr.msra.gmra.mxu0 %vm411_vm0, %v394_v23  ;;  %1129 = vmatprep.subr.mxu0 %v1583_v0  ;;  %v690_v58 = vld [vmem:[#allocation11 + $0x60] sm:$0xff]  ;;  %v689_v59 = vld [vmem:[#allocation11 + $0x58] sm:$0xff]  ;;  %v688_v60 = vld [vmem:[#allocation11 + $0x50] sm:$0xff] }
  0x96   : > { %1109 = vmatpush3.msra.mxu1 %v502_v25  ;;  %1161 = vmatprep.mubr.msk.f32.mxu0 %vm1584_vm1, %v1583_v0  ;;  %v687_v61 = vld [vmem:[#allocation11 + $0x48] sm:$0xff]  ;;  %v686_v62 = vld [vmem:[#allocation11 + $0x40] sm:$0xff]  ;;  %v685_v63 = vld [vmem:[#allocation11 + $0x38] sm:$0xff] }
  0x97   : > { %1110 = vmatprep.subr.mxu1 %v1583_v0  ;;  %1130 = vmatpush3.msra.mxu0 %v601_v34  ;;  %v684_v1 = vld [vmem:[#allocation11 + $0x30] sm:$0xff]  ;;  %v683_v2 = vld [vmem:[#allocation11 + $0x28] sm:$0xff]  ;;  %v682_v3 = vld [vmem:[#allocation11 + $0x20] sm:$0xff] }
  0x98   : > { %1111 = vmatpush3.msra.mxu1 %v501_v26  ;;  %1131 = vmatprep.subr.mxu0 %v1583_v0  ;;  %v681_v4 = vld [vmem:[#allocation11 + $0x18] sm:$0xff]  ;;  %v1018_v5 = vld [vmem:[%s1949_s2 + $0x1] ss:$0 sm:$0xff]  ;;  %v679_v11 = vld [vmem:[#allocation11 + $0x8] sm:$0xff] }
  0x99   : > { %1112 = vmatprep.subr.mxu1 %v1583_v0  ;;  %1132 = vmatpush3.msra.mxu0 %v600_v35  ;;  %v680_v10 = vld [vmem:[#allocation11 + $0x10] sm:$0xff]  ;;  %v678_v12 = vld [vmem:[#allocation11] sm:$0xff]  ;;  %v785_v13 = vld [vmem:[#allocation12 + $0x78] sm:$0xff] }
  0x9a   : > { %1113 = vmatpush3.msra.mxu1 %v500_v27  ;;  %1133 = vmatprep.subr.mxu0 %v1583_v0  ;;  %v784_v14 = vld [vmem:[#allocation12 + $0x70] sm:$0xff]  ;;  %v783_v15 = vld [vmem:[#allocation12 + $0x68] sm:$0xff]  ;;  %v782_v16 = vld [vmem:[#allocation12 + $0x60] sm:$0xff] }
  0x9b   : > { %1114 = vmatprep.subr.mxu1 %v1583_v0  ;;  %1134 = vmatpush3.msra.mxu0 %v599_v36  ;;  %v781_v17 = vld [vmem:[#allocation12 + $0x58] sm:$0xff]  ;;  %v780_v18 = vld [vmem:[#allocation12 + $0x50] sm:$0xff]  ;;  %v779_v19 = vld [vmem:[#allocation12 + $0x48] sm:$0xff] }
  0x9c   : > { %1115 = vmatpush3.msra.mxu1 %v499_v28  ;;  %1135 = vmatprep.subr.mxu0 %v1583_v0  ;;  %v778_v20 = vld [vmem:[#allocation12 + $0x40] sm:$0xff]  ;;  %v777_v21 = vld [vmem:[#allocation12 + $0x38] sm:$0xff]  ;;  %v776_v22 = vld [vmem:[#allocation12 + $0x30] sm:$0xff] }
  0x9d   : > { %1116 = vmatprep.subr.mxu1 %v1583_v0  ;;  %1136 = vmatpush3.msra.mxu0 %v598_v37  ;;  %v775_v23 = vld [vmem:[#allocation12 + $0x28] sm:$0xff]  ;;  %v774_v24 = vld [vmem:[#allocation12 + $0x20] sm:$0xff]  ;;  %v773_v25 = vld [vmem:[#allocation12 + $0x18] sm:$0xff] }
  0x9e   : > { %1117 = vmatpush3.msra.mxu1 %v498_v29  ;;  %1137 = vmatprep.subr.mxu0 %v1583_v0  ;;  %v1019_v26 = vld [vmem:[%s1949_s2 + $0x2] ss:$0 sm:$0xff]  ;;  %v1020_v34 = vld [vmem:[%s1949_s2 + $0x3] ss:$0 sm:$0xff] }
  0x9f   : > { %1118 = vmatprep.subr.mxu1 %v1583_v0  ;;  %1138 = vmatpush3.msra.mxu0 %v597_v38 }
  0xa0   : > { %1119 = vmatpush3.msra.mxu1 %v497_v30  ;;  %1139 = vmatprep.subr.mxu0 %v1583_v0 }
  0xa1   : > { %1120 = vmatprep.subr.mxu1 %v1583_v0  ;;  %1140 = vmatpush3.msra.mxu0 %v596_v39  ;;  %v1021_v39 = vld [vmem:[%s1954_s7] ss:$0 sm:$0xff] }
  0xa2   : > { %1121 = vmatpush3.msra.mxu1 %v496_v31  ;;  %1141 = vmatprep.subr.mxu0 %v1583_v0  ;;  %v772_v31 = vld [vmem:[#allocation12 + $0x10] sm:$0xff] }
  0xa3   : > { %1122 = vmatprep.subr.mxu1 %v1583_v0  ;;  %1142 = vmatpush3.msra.mxu0 %v595_v40 }
  0xa4   : > { %1123 = vmatpush3.msra.mxu1 %v495_v32  ;;  %1143 = vmatprep.subr.mxu0 %v1583_v0  ;;  %v771_v32 = vld [vmem:[#allocation12 + $0x8] sm:$0xff] }
  0xa5   : > { %1124 = vmatprep.subr.mxu1 %v1583_v0  ;;  %1144 = vmatpush3.msra.mxu0 %v594_v41 }
  0xa6   : > { %1125 = vmatpush3.msra.mxu1 %v494_v33  ;;  %1145 = vmatprep.subr.mxu0 %v1583_v0  ;;  %v770_v33 = vld [vmem:[#allocation12] sm:$0xff] }
  0xa7   : > { %1164 = vmatprep.subr.mxu1 %v1583_v0  ;;  %1146 = vmatpush3.msra.mxu0 %v593_v42 }
  0xa8   : > { %1147 = vmatprep.subr.mxu0 %v1583_v0 }
  0xa9   : > { %1148 = vmatpush3.msra.mxu0 %v592_v43 }
  0xaa   : > { %1149 = vmatprep.subr.mxu0 %v1583_v0 }
  0xab   : > { %1150 = vmatpush3.msra.mxu0 %v591_v44 }
  0xac   : > { %1151 = vmatprep.subr.mxu0 %v1583_v0 }
  0xad   : > { %1152 = vmatpush3.msra.mxu0 %v590_v45 }
  0xae   : > { %1153 = vmatprep.subr.mxu0 %v1583_v0 }
  0xaf   : > { %1154 = vmatpush3.msra.mxu0 %v589_v46 }
  0xb0   : > { %1155 = vmatprep.subr.mxu0 %v1583_v0 }
  0xb1   : > { %1156 = vmatpush3.msra.mxu0 %v588_v52 }
  0xb2   : > { %1157 = vmatprep.subr.mxu0 %v1583_v0 }
  0xb3   : > { %1158 = vmatpush3.msra.mxu0 %v587_v53 }
  0xb4   : > { %1159 = vmatprep.subr.mxu0 %v1583_v0 }
  0xb5   : > { %1160 = vmatpush3.msra.mxu0 %v586_v54 }
  0xb6   : > { %1199 = vmatprep.subr.mxu0 %v1583_v0 }
 0x155   : > { %v1854_v47 = vpop.f32.mrf.mxu0 }
 0x157   : > { %v483_v49 = vpop.f32.mrf.mxu0 }
 0x158   : > { %v492_v50 = vadd.f32 %v1017_v48, %v483_v49 }
 0x15a   : > { %v493_v51 = vmax.f32 %v492_v50, 0.0 }
 0x15c   : > { %1127 = vmatmul.mubr.f32.vlgmr.msra.gmra.mxu1 %v493_v51 }
 0x15d   : > { %1196 = vmatprep.mubr.msk.f32.mxu1 %vm1584_vm1, %v1583_v0  ;;  %1165 = vmatpush3.msra.mxu1 %v693_v55 }
 0x15e   : > { %1166 = vmatprep.subr.mxu1 %v1583_v0 }
 0x15f   : > { %1167 = vmatpush3.msra.mxu1 %v692_v56 }
 0x160   : > { %1168 = vmatprep.subr.mxu1 %v1583_v0 }
 0x161   : > { %1169 = vmatpush3.msra.mxu1 %v691_v57 }
 0x162   : > { %1170 = vmatprep.subr.mxu1 %v1583_v0 }
 0x163   : > { %1171 = vmatpush3.msra.mxu1 %v690_v58 }
 0x164   : > { %1172 = vmatprep.subr.mxu1 %v1583_v0 }
 0x165   : > { %1173 = vmatpush3.msra.mxu1 %v689_v59 }
 0x166   : > { %1174 = vmatprep.subr.mxu1 %v1583_v0 }
 0x167   : > { %1175 = vmatpush3.msra.mxu1 %v688_v60 }
 0x168   : > { %1176 = vmatprep.subr.mxu1 %v1583_v0 }
 0x169   : > { %1177 = vmatpush3.msra.mxu1 %v687_v61 }
 0x16a   : > { %1178 = vmatprep.subr.mxu1 %v1583_v0 }
 0x16b   : > { %1179 = vmatpush3.msra.mxu1 %v686_v62 }
 0x16c   : > { %1180 = vmatprep.subr.mxu1 %v1583_v0 }
 0x16d   : > { %1181 = vmatpush3.msra.mxu1 %v685_v63 }
 0x16e   : > { %1182 = vmatprep.subr.mxu1 %v1583_v0 }
 0x16f   : > { %1183 = vmatpush3.msra.mxu1 %v684_v1 }
 0x170   : > { %1184 = vmatprep.subr.mxu1 %v1583_v0 }
 0x171   : > { %1185 = vmatpush3.msra.mxu1 %v683_v2 }
 0x172   : > { %1186 = vmatprep.subr.mxu1 %v1583_v0 }
 0x173   : > { %1187 = vmatpush3.msra.mxu1 %v682_v3 }
 0x174   : > { %1188 = vmatprep.subr.mxu1 %v1583_v0 }
 0x175   : > { %1189 = vmatpush3.msra.mxu1 %v681_v4 }
 0x176   : > { %1190 = vmatprep.subr.mxu1 %v1583_v0 }
 0x177   : > { %1191 = vmatpush3.msra.mxu1 %v680_v10 }
 0x178   : > { %1192 = vmatprep.subr.mxu1 %v1583_v0 }
 0x179   : > { %1193 = vmatpush3.msra.mxu1 %v679_v11 }
 0x17a   : > { %1194 = vmatprep.subr.mxu1 %v1583_v0 }
 0x17b   : > { %1195 = vmatpush3.msra.mxu1 %v678_v12 }
 0x21c   : > { %v581_v6 = vpop.f32.mrf.mxu1 }
 0x21d   : > { %v582_v7 = vadd.f32 %v1018_v5, %v581_v6 }
 0x21e   : > { %v1128_v8 = vpop.f32.mrf.mxu1 }
 0x21f   : > { %v585_v9 = vmax.f32 %v582_v7, 0.0 }
 0x221   : > { %1162 = vmatmul.mubr.f32.vlgmr.msra.gmra.mxu0 %v585_v9 }
 0x222   : > { %1231 = vmatprep.mubr.msk.f32.mxu0 %vm1584_vm1, %v1583_v0  ;;  %1200 = vmatpush3.msra.mxu0 %v785_v13 }
 0x223   : > { %1201 = vmatprep.subr.mxu0 %v1583_v0 }
 0x224   : > { %1202 = vmatpush3.msra.mxu0 %v784_v14 }
 0x225   : > { %1203 = vmatprep.subr.mxu0 %v1583_v0 }
 0x226   : > { %1204 = vmatpush3.msra.mxu0 %v783_v15 }
 0x227   : > { %1205 = vmatprep.subr.mxu0 %v1583_v0 }
 0x228   : > { %1206 = vmatpush3.msra.mxu0 %v782_v16 }
 0x229   : > { %1207 = vmatprep.subr.mxu0 %v1583_v0 }
 0x22a   : > { %1208 = vmatpush3.msra.mxu0 %v781_v17 }
 0x22b   : > { %1209 = vmatprep.subr.mxu0 %v1583_v0 }
 0x22c   : > { %1210 = vmatpush3.msra.mxu0 %v780_v18 }
 0x22d   : > { %1211 = vmatprep.subr.mxu0 %v1583_v0 }
 0x22e   : > { %1212 = vmatpush3.msra.mxu0 %v779_v19 }
 0x22f   : > { %1213 = vmatprep.subr.mxu0 %v1583_v0 }
 0x230   : > { %1214 = vmatpush3.msra.mxu0 %v778_v20 }
 0x231   : > { %1215 = vmatprep.subr.mxu0 %v1583_v0 }
 0x232   : > { %1216 = vmatpush3.msra.mxu0 %v777_v21 }
 0x233   : > { %1217 = vmatprep.subr.mxu0 %v1583_v0 }
 0x234   : > { %1218 = vmatpush3.msra.mxu0 %v776_v22 }
 0x235   : > { %1219 = vmatprep.subr.mxu0 %v1583_v0 }
 0x236   : > { %1220 = vmatpush3.msra.mxu0 %v775_v23 }
 0x237   : > { %1221 = vmatprep.subr.mxu0 %v1583_v0 }
 0x238   : > { %1222 = vmatpush3.msra.mxu0 %v774_v24 }
 0x239   : > { %1223 = vmatprep.subr.mxu0 %v1583_v0 }
 0x23a   : > { %1224 = vmatpush3.msra.mxu0 %v773_v25 }
 0x23b   : > { %1225 = vmatprep.subr.mxu0 %v1583_v0 }
 0x23c   : > { %1226 = vmatpush3.msra.mxu0 %v772_v31 }
 0x23d   : > { %1227 = vmatprep.subr.mxu0 %v1583_v0 }
 0x23e   : > { %1228 = vmatpush3.msra.mxu0 %v771_v32 }
 0x23f   : > { %1229 = vmatprep.subr.mxu0 %v1583_v0 }
 0x240   : > { %1230 = vmatpush3.msra.mxu0 %v770_v33 }
 0x2e1   : > { %v673_v27 = vpop.f32.mrf.mxu0 }
 0x2e2   : > { %v674_v28 = vadd.f32 %v1019_v26, %v673_v27 }
 0x2e3   : > { %v1163_v29 = vpop.f32.mrf.mxu0 }
 0x2e4   : > { %v677_v30 = vmax.f32 %v674_v28, 0.0 }
 0x2e6   : > { %1197 = vmatmul.mubr.f32.vlgmr.msra.gmra.mxu1 %v677_v30 }
 0x3a6   : > { %v765_v35 = vpop.f32.mrf.mxu1 }
 0x3a7   : > { %v766_v36 = vadd.f32 %v1020_v34, %v765_v35 }
 0x3a8   : > { %v1198_v37 = vpop.f32.mrf.mxu1 }
 0x3a9   : > { %v769_v38 = vmax.f32 %v766_v36, 0.0 }
 0x3ab   : > { %1232 = vmatmul.mubr.f32.vlgmr.msra.gmra.mxu0 %v769_v38 }
 0x46b   : > { %v859_v40 = vpop.f32.mrf.mxu0 }
 0x46c   : > { %v860_v0 = vadd.f32 %v1021_v39, %v859_v40 }
 0x46d   : > { %v1233_v41 = vpop.f32.mrf.mxu0 }
 0x46e   : > { %v864_v42 = vadd.f32 %v860_v0, %v1854_v47 }
 0x470   : > { %865 = vst.msk [vmem:[%s393_s26] sm:$0xff] %vm411_vm0, %v864_v42 }
 0x471   : > { %1508 = shalt.err (!%p1505_p1)
}
 0x472   : > { %s1509_s16 = scalar_lea.hbm %s878_s20, 128  ;;  %s1513_s17 = scalar_lea.hbm %s1955_s8, 256 }
 0x473   : > { %p1510_p3 = scmp.ne.s32.totalorder %s878_s20, %s1509_s16  ;;  %p1514_p6 = scmp.lt.s32.totalorder %s878_s20, %s1955_s8 }
 0x474   : > { %p1515_p2 = scmp.lt.s32.totalorder %s1513_s17, %s1509_s16 }
 0x475   : > { %p1511_p4 = pnand %p1510_p3, %p1981_p11 }
 0x476   : > { %p1516_p7 = por %p1515_p2, %p1514_p6 }
 0x477   : > { %p1512_p12 = pneg %p1511_p4 }
 0x479   : > { %p1517_p8 = pnand %p1516_p7, %p1512_p12 }
 0x47b   : > { %1520 = shalt.err (!%p1517_p8)
}
 0x47c   : > { %1256 = dma.vmem_to_hbm [thread:$0]  (%p1981_p11), %s881_s3, 128, %s878_s20, %s867_s9  }
 0x47d PF: > { %s892_s10 = sand.u32 1, %s1559_s27   ;;  %p1982_p0 = scmp.ne.s32.totalorder %s1971_s21, 0 }
 0x47e   : > { %p1983_p13 = scmp.ge.s32.totalorder %s1571_s30, 2  ;;  %s893_s26 = scalar_lea.sflag [#allocation5], %s892_s10 }
 0x480   : > { %p1279_p5 = pnand %p1983_p13, %p1982_p0 }
 0x482   : > { %p1280_p9 = pneg %p1279_p5 }
 0x484   : > { %1554 = dma.done.wait (%p1280_p9), %s893_s26, 128  }
 0x485   : > { %1556 = vsyncadd (%p1280_p9), %s893_s26, 4294967168  ;;  %p24_p10 = scmp.ge.s32.totalorder %s1735_s18, 4   ;;  %s1984_s27 = smov %s1563_s28 }
 0x486   : > { %s1985_s28 = smov %s1567_s29  ;;  %s1986_s29 = smov %s1747_s15 }
 0x487   : > { %s1987_s30 = smov %s1735_s18  ;;  %26 = sbr.rel (!%p24_p10) target bundleno = 12 (0xc), region = 117 }
 0x48c   :  { %898 = vsyncpa [#allocation4], 1 }
 0x48d   :  { %900 = vsyncpa [#allocation4 + $0x1], 1 }
 0x48e   :  { %901 = vsyncpa [#allocation7], 1 }
 0x48f   :  { %902 = vsyncpa [#allocation10], 1 }
 0x490   :  { %903 = vsyncpa [#allocation13], 1 }
 0x491   :  { %904 = vsyncpa [#allocation5], 1 }
 0x492   :  { %906 = vsyncpa [#allocation5 + $0x1], 1 }

</bundles_post_ra>
